<compile_context>
chip_gen: v5e
topology: v5e:2x2
jax: 0.10.0
libtpu: 0.0.40
codegen_flags: <defaults>
</compile_context>

<pallas_src>
import functools

import jax
import jax.numpy as jnp
from jax.experimental import pallas as pl
from jax.experimental.pallas import tpu as pltpu

EPS = 1e-5
MATMUL_DTYPE = jnp.bfloat16   # set to jnp.float32 to disable bf16 at the MXU
OUT_PAD = 8                   # output_fc's 3 rows padded to the sublane granule


def agent_kernel(x_ref, w1_ref, w2_ref, w3_ref, prow_ref, pcol_ref, o_ref, *,
                 batch):
    """Whole-batch-resident forward pass (P = max(input_size, 64)).

    x_ref   : (Bp, F0)      f32   input; rows >= batch are exact zero padding
    w1_ref  : (64, F0)      bf16  fc1 weight, PyTorch (out, in) layout
    w2_ref  : (64, 64)      bf16  fc2 weight
    w3_ref  : (OUT_PAD, 64) bf16  output_fc weight, rows 3..7 zero
    prow_ref: (8, P)        f32   rows [g0, be0, g1, be1, g2, be2, 0, 0]
    pcol_ref: (64, 4)       f32   cols [b1, b2, b3(first 3 rows), 0]
    o_ref   : (OUT_PAD, Bp) f32   rows 0..2 / cols 0..batch-1 valid
    """
    f0 = x_ref.shape[1]
    bp = x_ref.shape[0]
    n_pad = bp - batch
    inv_b = 1.0 / batch

    x = x_ref[...]                       # (Bp, F0) f32
    w1 = w1_ref[...]                     # bf16
    w2 = w2_ref[...]
    w3 = w3_ref[...]
    prow = prow_ref[...]                 # (8, P) f32
    pcol = pcol_ref[...]                 # (64, 4) f32

    g0, be0 = prow[0:1, :f0], prow[1:2, :f0]
    g1, be1 = prow[2:3, :64], prow[3:4, :64]
    g2, be2 = prow[4:5, :64], prow[5:6, :64]
    b1, b2 = pcol[:, 0:1], pcol[:, 1:2]
    b3 = pcol[:OUT_PAD, 2:3]

    # 64x64 identity for the tiny column->row relayout (broadcast * mask +
    # sublane reduce): avoids an explicit transpose op on (64, 1) vectors.
    rr = jax.lax.broadcasted_iota(jnp.int32, (64, 64), 0)
    cc = jax.lax.broadcasted_iota(jnp.int32, (64, 64), 1)
    eye = (rr == cc).astype(jnp.float32)

    def col_to_row(col):                            # (64, 1) -> (1, 64)
        return jnp.sum(col * eye, axis=0, keepdims=True)

    def bn_fold(mu, ex2, gamma, beta):
        # training-mode BN (biased variance, eps=1e-5) as scale/shift rows.
        var = jnp.maximum(ex2 - mu * mu, 0.0)       # clamp one-pass variance
        scale = gamma * jax.lax.rsqrt(var + EPS)
        shift = beta - mu * scale
        return scale, shift

    def fold_into_linear(w, scale_row, shift_row, b_col):
        # W @ (scale*h + shift) + b == (W*scale) @ h + (W @ shift + b)
        ws = (w * scale_row).astype(MATMUL_DTYPE)                     # (out, in)
        bias = jnp.sum(w * shift_row, axis=1, keepdims=True) + b_col  # (out, 1)
        return ws, bias

    if n_pad:
        lane = jax.lax.broadcasted_iota(jnp.int32, (1, bp), 1)
        mask = (lane < batch).astype(jnp.float32)   # 1.0 real col, 0.0 pad col

    # ---- bn_input folded into fc1 ---------------------------------------
    mu0 = jnp.sum(x, axis=0, keepdims=True) * inv_b        # pad rows are zero
    ex20 = jnp.sum(x * x, axis=0, keepdims=True) * inv_b
    s0, t0 = bn_fold(mu0, ex20, g0, be0)
    w1s, bias1 = fold_into_linear(w1, s0, t0, b1)
    z1 = jax.lax.dot_general(w1s, x.astype(MATMUL_DTYPE),
                             (((1,), (1,)), ((), ())),     # contract both in-dims
                             preferred_element_type=jnp.float32)
    h1 = jnp.maximum(z1 + bias1, 0.0)                      # (64, Bp)
    if n_pad:
        h1 = h1 * mask                                     # keep pad cols out of stats

    # ---- bn1 folded into fc2 ---------------------------------------------
    s1c = jnp.sum(h1, axis=1, keepdims=True)               # (64, 1) lane reduce
    q1c = jnp.sum(h1 * h1, axis=1, keepdims=True)
    mu1, ex21 = col_to_row(s1c) * inv_b, col_to_row(q1c) * inv_b
    s1, t1 = bn_fold(mu1, ex21, g1, be1)
    w2s, bias2 = fold_into_linear(w2, s1, t1, b2)
    h2 = jnp.maximum(
        jnp.dot(w2s, h1.astype(MATMUL_DTYPE),
                preferred_element_type=jnp.float32) + bias2, 0.0)
    if n_pad:
        h2 = h2 * mask

    # ---- bn2 folded into output_fc -----------------------------------------
    s2c = jnp.sum(h2, axis=1, keepdims=True)
    q2c = jnp.sum(h2 * h2, axis=1, keepdims=True)
    mu2, ex22 = col_to_row(s2c) * inv_b, col_to_row(q2c) * inv_b
    s2, t2 = bn_fold(mu2, ex22, g2, be2)
    w3s, bias3 = fold_into_linear(w3, s2, t2, b3)
    o_ref[...] = jnp.dot(w3s, h2.astype(MATMUL_DTYPE),
                         preferred_element_type=jnp.float32) + bias3


def agent_forward(x, params):
    """x: (B, input_size) f32 -> (B, 3) f32, same semantics as Agent.forward."""
    B, F0 = x.shape
    Bp = ((max(B, 128) + 127) // 128) * 128            # lane-dense padded batch
    if Bp != B:
        x = jnp.pad(x, ((0, Bp - B), (0, 0)))          # exact zero padding

    args = (x, params["w1"], params["w2"], params["w3p"],
            params["prow"], params["pcol"])

    # VMEM budget: x + output + ~6 live (64, Bp) f32-equivalent temps, x2
    # headroom, capped at 48 MiB (fits v7x's 64 MiB physical VMEM).
    est = 4 * Bp * (F0 + OUT_PAD + 6 * 64) + (2 << 20)
    vmem_limit = int(min(max(2 * est, 8 << 20), 48 << 20))

    kernel = functools.partial(agent_kernel, batch=B)
    out = pl.pallas_call(
        kernel,
        out_shape=jax.ShapeDtypeStruct((OUT_PAD, Bp), jnp.float32),
        grid=(1,),
        in_specs=[pl.BlockSpec(a.shape, lambda i: (0, 0)) for a in args],
        out_specs=pl.BlockSpec((OUT_PAD, Bp), lambda i: (0, 0)),
        compiler_params=pltpu.CompilerParams(
            dimension_semantics=("arbitrary",),
            vmem_limit_bytes=vmem_limit),
    )(*args)
    return out[:3, :B].T                               # drop padding -> (B, 3)


def init_params(key, input_size):
    """Deterministic init mirroring Agent.__init__ (PyTorch-style Linear init)."""
    ks = jax.random.split(key, 9)

    def linear_init(kw, kb, fan_in, fan_out):
        bound = 1.0 / float(fan_in) ** 0.5
        w = jax.random.uniform(kw, (fan_out, fan_in), jnp.float32, -bound, bound)
        b = jax.random.uniform(kb, (fan_out,), jnp.float32, -bound, bound)
        return w, b

    w1, b1 = linear_init(ks[0], ks[1], input_size, 64)
    w2, b2 = linear_init(ks[2], ks[3], 64, 64)
    w3, b3 = linear_init(ks[4], ks[5], 64, 3)

    def bn_affine(k, n):
        k1, k2 = jax.random.split(k)
        gamma = 1.0 + 0.1 * jax.random.normal(k1, (n,), jnp.float32)
        beta = 0.1 * jax.random.normal(k2, (n,), jnp.float32)
        return gamma, beta

    g0, be0 = bn_affine(ks[6], input_size)
    g1, be1 = bn_affine(ks[7], 64)
    g2, be2 = bn_affine(ks[8], 64)

    P = max(input_size, 64)                            # works for input_size > 64 too
    prow = jnp.zeros((8, P), jnp.float32)
    prow = prow.at[0, :input_size].set(g0).at[1, :input_size].set(be0)
    prow = prow.at[2, :64].set(g1).at[3, :64].set(be1)
    prow = prow.at[4, :64].set(g2).at[5, :64].set(be2)

    pcol = jnp.zeros((64, 4), jnp.float32)
    pcol = pcol.at[:, 0].set(b1).at[:, 1].set(b2).at[:3, 2].set(b3)

    w3p = jnp.zeros((OUT_PAD, 64), jnp.float32).at[:3].set(w3)

    return dict(
        # weights pre-cast to the MXU dtype on the host (halves weight DMA bytes)
        w1=w1.astype(MATMUL_DTYPE),
        w2=w2.astype(MATMUL_DTYPE),
        w3p=w3p.astype(MATMUL_DTYPE),
        prow=prow, pcol=pcol,
        # full-precision copies for the pure-JAX reference
        raw=dict(w1=w1, b1=b1, w2=w2, b2=b2, w3=w3, b3=b3,
                 g0=g0, be0=be0, g1=g1, be1=be1, g2=g2, be2=be2),
    )


def agent_forward_ref(x, p):
    """Pure-JAX f32 reference matching PyTorch Agent.forward (training-mode BN)."""
    r = p["raw"]

    def bn(h, g, b):
        mu = jnp.mean(h, axis=0, keepdims=True)
        var = jnp.mean((h - mu) ** 2, axis=0, keepdims=True)
        return (h - mu) / jnp.sqrt(var + EPS) * g + b

    h = bn(x, r["g0"], r["be0"])
    h = jnp.maximum(h @ r["w1"].T + r["b1"], 0.0)
    h = bn(h, r["g1"], r["be1"])
    h = jnp.maximum(h @ r["w2"].T + r["b2"], 0.0)
    h = bn(h, r["g2"], r["be2"])
    return h @ r["w3"].T + r["b3"]


if __name__ == "__main__":
    key = jax.random.PRNGKey(0)
    input_size = 16
    batch = 64           # non-multiple of 128: exercises lane padding + masking

    kx, kp = jax.random.split(key)
    x = jax.random.normal(kx, (batch, input_size), jnp.float32)
    params = init_params(kp, input_size)

    out = jax.block_until_ready(agent_forward(x, params))
    ref = agent_forward_ref(x, params)

    assert out.shape == (batch, 3)
    # bf16 MXU operands (f32 accumulation, f32 BN stats) vs an all-f32
    # reference: loosened tolerance.  Set MATMUL_DTYPE = jnp.float32 for exact.
    assert jnp.allclose(out, ref, atol=5e-2, rtol=5e-2), "mismatch vs JAX reference"
    print("KERNEL_OK")
</pallas_src>

<mosaic_0001>
module attributes {stable_mosaic.version = 11 : i64} {
  func.func @agent_kernel(%arg0: i32, %arg1: memref<128x16xf32, #tpu.memory_space<vmem>>, %arg2: memref<64x16xbf16, #tpu.memory_space<vmem>>, %arg3: memref<64x64xbf16, #tpu.memory_space<vmem>>, %arg4: memref<8x64xbf16, #tpu.memory_space<vmem>>, %arg5: memref<8x64xf32, #tpu.memory_space<vmem>>, %arg6: memref<64x4xf32, #tpu.memory_space<vmem>>, %arg7: memref<8x128xf32, #tpu.memory_space<vmem>>) attributes {dimension_semantics = [#tpu.dimension_semantics<arbitrary>], iteration_bounds = array<i64: 1>, scalar_prefetch = 0 : i64, scratch_operands = 0 : i64, tpu.core_type = #tpu.core_type<tc>, window_params = [{pipeline_mode = #tpu.pipeline_mode<synchronous>, transform_indices = @transform_0, window_bounds = array<i64: 128, 16>}, {pipeline_mode = #tpu.pipeline_mode<synchronous>, transform_indices = @transform_1, window_bounds = array<i64: 64, 16>}, {pipeline_mode = #tpu.pipeline_mode<synchronous>, transform_indices = @transform_2, window_bounds = array<i64: 64, 64>}, {pipeline_mode = #tpu.pipeline_mode<synchronous>, transform_indices = @transform_3, window_bounds = array<i64: 8, 64>}, {pipeline_mode = #tpu.pipeline_mode<synchronous>, transform_indices = @transform_4, window_bounds = array<i64: 8, 64>}, {pipeline_mode = #tpu.pipeline_mode<synchronous>, transform_indices = @transform_5, window_bounds = array<i64: 64, 4>}, {pipeline_mode = #tpu.pipeline_mode<synchronous>, transform_indices = @transform_6, window_bounds = array<i64: 8, 128>}]} {
    %c0 = arith.constant 0 : index
    %c0_0 = arith.constant 0 : index
    %0 = vector.load %arg1[%c0, %c0_0] : memref<128x16xf32, #tpu.memory_space<vmem>>, vector<128x16xf32>
    %c0_1 = arith.constant 0 : index
    %c0_2 = arith.constant 0 : index
    %1 = vector.load %arg2[%c0_1, %c0_2] : memref<64x16xbf16, #tpu.memory_space<vmem>>, vector<64x16xbf16>
    %c0_3 = arith.constant 0 : index
    %c0_4 = arith.constant 0 : index
    %2 = vector.load %arg3[%c0_3, %c0_4] : memref<64x64xbf16, #tpu.memory_space<vmem>>, vector<64x64xbf16>
    %c0_5 = arith.constant 0 : index
    %c0_6 = arith.constant 0 : index
    %3 = vector.load %arg4[%c0_5, %c0_6] : memref<8x64xbf16, #tpu.memory_space<vmem>>, vector<8x64xbf16>
    %c0_7 = arith.constant 0 : index
    %c0_8 = arith.constant 0 : index
    %4 = vector.load %arg5[%c0_7, %c0_8] : memref<8x64xf32, #tpu.memory_space<vmem>>, vector<8x64xf32>
    %c0_9 = arith.constant 0 : index
    %c0_10 = arith.constant 0 : index
    %5 = vector.load %arg6[%c0_9, %c0_10] : memref<64x4xf32, #tpu.memory_space<vmem>>, vector<64x4xf32>
    %6 = vector.extract_strided_slice %4 {offsets = [0, 0], sizes = [1, 16], strides = [1, 1]} : vector<8x64xf32> to vector<1x16xf32>
    %7 = vector.extract_strided_slice %4 {offsets = [1, 0], sizes = [1, 16], strides = [1, 1]} : vector<8x64xf32> to vector<1x16xf32>
    %8 = vector.extract_strided_slice %4 {offsets = [2, 0], sizes = [1, 64], strides = [1, 1]} : vector<8x64xf32> to vector<1x64xf32>
    %9 = vector.extract_strided_slice %4 {offsets = [3, 0], sizes = [1, 64], strides = [1, 1]} : vector<8x64xf32> to vector<1x64xf32>
    %10 = vector.extract_strided_slice %4 {offsets = [4, 0], sizes = [1, 64], strides = [1, 1]} : vector<8x64xf32> to vector<1x64xf32>
    %11 = vector.extract_strided_slice %4 {offsets = [5, 0], sizes = [1, 64], strides = [1, 1]} : vector<8x64xf32> to vector<1x64xf32>
    %12 = vector.extract_strided_slice %5 {offsets = [0, 0], sizes = [64, 1], strides = [1, 1]} : vector<64x4xf32> to vector<64x1xf32>
    %13 = vector.extract_strided_slice %5 {offsets = [0, 1], sizes = [64, 1], strides = [1, 1]} : vector<64x4xf32> to vector<64x1xf32>
    %14 = vector.extract_strided_slice %5 {offsets = [0, 2], sizes = [8, 1], strides = [1, 1]} : vector<64x4xf32> to vector<8x1xf32>
    %15 = tpu.iota {dimensions = array<i32: 0>} : vector<64x64xi32>
    %16 = tpu.iota {dimensions = array<i32: 1>} : vector<64x64xi32>
    %17 = arith.cmpi eq, %15, %16 : vector<64x64xi32>
    %18 = arith.extui %17 : vector<64x64xi1> to vector<64x64xi32>
    %19 = arith.sitofp %18 : vector<64x64xi32> to vector<64x64xf32>
    %20 = tpu.iota {dimensions = array<i32: 1>} : vector<1x128xi32>
    %c64_i32 = arith.constant 64 : i32
    %21 = vector.broadcast %c64_i32 : i32 to vector<1x128xi32>
    %22 = arith.cmpi slt, %20, %21 : vector<1x128xi32>
    %23 = arith.extui %22 : vector<1x128xi1> to vector<1x128xi32>
    %24 = arith.sitofp %23 : vector<1x128xi32> to vector<1x128xf32>
    %cst = arith.constant dense<0.000000e+00> : vector<16xf32>
    %25 = vector.multi_reduction <add>, %0, %cst [0] : vector<128x16xf32> to vector<16xf32>
    %26 = vector.shape_cast %25 : vector<16xf32> to vector<1x16xf32>
    %cst_11 = arith.constant 1.562500e-02 : f32
    %27 = vector.broadcast %cst_11 : f32 to vector<1x16xf32>
    %28 = arith.mulf %26, %27 : vector<1x16xf32>
    %29 = arith.mulf %0, %0 : vector<128x16xf32>
    %cst_12 = arith.constant dense<0.000000e+00> : vector<16xf32>
    %30 = vector.multi_reduction <add>, %29, %cst_12 [0] : vector<128x16xf32> to vector<16xf32>
    %31 = vector.shape_cast %30 : vector<16xf32> to vector<1x16xf32>
    %cst_13 = arith.constant 1.562500e-02 : f32
    %32 = vector.broadcast %cst_13 : f32 to vector<1x16xf32>
    %33 = arith.mulf %31, %32 : vector<1x16xf32>
    %34 = arith.mulf %28, %28 : vector<1x16xf32>
    %35 = arith.subf %33, %34 : vector<1x16xf32>
    %cst_14 = arith.constant 0.000000e+00 : f32
    %36 = vector.broadcast %cst_14 : f32 to vector<1x16xf32>
    %37 = arith.maximumf %35, %36 : vector<1x16xf32>
    %cst_15 = arith.constant 9.99999974E-6 : f32
    %38 = vector.broadcast %cst_15 : f32 to vector<1x16xf32>
    %39 = arith.addf %37, %38 : vector<1x16xf32>
    %40 = math.rsqrt %39 : vector<1x16xf32>
    %41 = arith.mulf %6, %40 : vector<1x16xf32>
    %42 = arith.mulf %28, %41 : vector<1x16xf32>
    %43 = arith.subf %7, %42 : vector<1x16xf32>
    %44 = arith.extf %1 : vector<64x16xbf16> to vector<64x16xf32>
    %45 = vector.broadcast %41 : vector<1x16xf32> to vector<64x16xf32>
    %46 = arith.mulf %44, %45 : vector<64x16xf32>
    %47 = arith.truncf %46 : vector<64x16xf32> to vector<64x16xbf16>
    %48 = arith.extf %1 : vector<64x16xbf16> to vector<64x16xf32>
    %49 = vector.broadcast %43 : vector<1x16xf32> to vector<64x16xf32>
    %50 = arith.mulf %48, %49 : vector<64x16xf32>
    %cst_16 = arith.constant dense<0.000000e+00> : vector<64xf32>
    %51 = vector.multi_reduction <add>, %50, %cst_16 [1] : vector<64x16xf32> to vector<64xf32>
    %52 = vector.shape_cast %51 : vector<64xf32> to vector<64x1xf32>
    %53 = arith.addf %52, %12 : vector<64x1xf32>
    %54 = arith.truncf %0 : vector<128x16xf32> to vector<128x16xbf16>
    %cst_17 = arith.constant dense<0.000000e+00> : vector<64x128xf32>
    %55 = tpu.matmul %47, %54, %cst_17 {dimension_numbers = #tpu.dot_dimension_numbers<[1], [1], [0], [0], [0, 0, 1, 0], [], []>} : vector<64x16xbf16>, vector<128x16xbf16>, vector<64x128xf32> -> vector<64x128xf32>
    %56 = vector.broadcast %53 : vector<64x1xf32> to vector<64x128xf32>
    %57 = arith.addf %55, %56 : vector<64x128xf32>
    %cst_18 = arith.constant 0.000000e+00 : f32
    %58 = vector.broadcast %cst_18 : f32 to vector<64x128xf32>
    %59 = arith.maximumf %57, %58 : vector<64x128xf32>
    %60 = vector.broadcast %24 : vector<1x128xf32> to vector<64x128xf32>
    %61 = arith.mulf %59, %60 : vector<64x128xf32>
    %cst_19 = arith.constant dense<0.000000e+00> : vector<64xf32>
    %62 = vector.multi_reduction <add>, %61, %cst_19 [1] : vector<64x128xf32> to vector<64xf32>
    %63 = vector.shape_cast %62 : vector<64xf32> to vector<64x1xf32>
    %64 = arith.mulf %61, %61 : vector<64x128xf32>
    %cst_20 = arith.constant dense<0.000000e+00> : vector<64xf32>
    %65 = vector.multi_reduction <add>, %64, %cst_20 [1] : vector<64x128xf32> to vector<64xf32>
    %66 = vector.shape_cast %65 : vector<64xf32> to vector<64x1xf32>
    %67 = vector.broadcast %63 : vector<64x1xf32> to vector<64x64xf32>
    %68 = arith.mulf %67, %19 : vector<64x64xf32>
    %cst_21 = arith.constant dense<0.000000e+00> : vector<64xf32>
    %69 = vector.multi_reduction <add>, %68, %cst_21 [0] : vector<64x64xf32> to vector<64xf32>
    %70 = vector.shape_cast %69 : vector<64xf32> to vector<1x64xf32>
    %cst_22 = arith.constant 1.562500e-02 : f32
    %71 = vector.broadcast %cst_22 : f32 to vector<1x64xf32>
    %72 = arith.mulf %70, %71 : vector<1x64xf32>
    %73 = vector.broadcast %66 : vector<64x1xf32> to vector<64x64xf32>
    %74 = arith.mulf %73, %19 : vector<64x64xf32>
    %cst_23 = arith.constant dense<0.000000e+00> : vector<64xf32>
    %75 = vector.multi_reduction <add>, %74, %cst_23 [0] : vector<64x64xf32> to vector<64xf32>
    %76 = vector.shape_cast %75 : vector<64xf32> to vector<1x64xf32>
    %cst_24 = arith.constant 1.562500e-02 : f32
    %77 = vector.broadcast %cst_24 : f32 to vector<1x64xf32>
    %78 = arith.mulf %76, %77 : vector<1x64xf32>
    %79 = arith.mulf %72, %72 : vector<1x64xf32>
    %80 = arith.subf %78, %79 : vector<1x64xf32>
    %cst_25 = arith.constant 0.000000e+00 : f32
    %81 = vector.broadcast %cst_25 : f32 to vector<1x64xf32>
    %82 = arith.maximumf %80, %81 : vector<1x64xf32>
    %cst_26 = arith.constant 9.99999974E-6 : f32
    %83 = vector.broadcast %cst_26 : f32 to vector<1x64xf32>
    %84 = arith.addf %82, %83 : vector<1x64xf32>
    %85 = math.rsqrt %84 : vector<1x64xf32>
    %86 = arith.mulf %8, %85 : vector<1x64xf32>
    %87 = arith.mulf %72, %86 : vector<1x64xf32>
    %88 = arith.subf %9, %87 : vector<1x64xf32>
    %89 = arith.extf %2 : vector<64x64xbf16> to vector<64x64xf32>
    %90 = vector.broadcast %86 : vector<1x64xf32> to vector<64x64xf32>
    %91 = arith.mulf %89, %90 : vector<64x64xf32>
    %92 = arith.truncf %91 : vector<64x64xf32> to vector<64x64xbf16>
    %93 = arith.extf %2 : vector<64x64xbf16> to vector<64x64xf32>
    %94 = vector.broadcast %88 : vector<1x64xf32> to vector<64x64xf32>
    %95 = arith.mulf %93, %94 : vector<64x64xf32>
    %cst_27 = arith.constant dense<0.000000e+00> : vector<64xf32>
    %96 = vector.multi_reduction <add>, %95, %cst_27 [1] : vector<64x64xf32> to vector<64xf32>
    %97 = vector.shape_cast %96 : vector<64xf32> to vector<64x1xf32>
    %98 = arith.addf %97, %13 : vector<64x1xf32>
    %99 = arith.truncf %61 : vector<64x128xf32> to vector<64x128xbf16>
    %cst_28 = arith.constant dense<0.000000e+00> : vector<64x128xf32>
    %100 = tpu.matmul %92, %99, %cst_28 {dimension_numbers = #tpu.dot_dimension_numbers<[1], [0], [0], [1], [0, 0, 1, 1], [], []>} : vector<64x64xbf16>, vector<64x128xbf16>, vector<64x128xf32> -> vector<64x128xf32>
    %101 = vector.broadcast %98 : vector<64x1xf32> to vector<64x128xf32>
    %102 = arith.addf %100, %101 : vector<64x128xf32>
    %cst_29 = arith.constant 0.000000e+00 : f32
    %103 = vector.broadcast %cst_29 : f32 to vector<64x128xf32>
    %104 = arith.maximumf %102, %103 : vector<64x128xf32>
    %105 = vector.broadcast %24 : vector<1x128xf32> to vector<64x128xf32>
    %106 = arith.mulf %104, %105 : vector<64x128xf32>
    %cst_30 = arith.constant dense<0.000000e+00> : vector<64xf32>
    %107 = vector.multi_reduction <add>, %106, %cst_30 [1] : vector<64x128xf32> to vector<64xf32>
    %108 = vector.shape_cast %107 : vector<64xf32> to vector<64x1xf32>
    %109 = arith.mulf %106, %106 : vector<64x128xf32>
    %cst_31 = arith.constant dense<0.000000e+00> : vector<64xf32>
    %110 = vector.multi_reduction <add>, %109, %cst_31 [1] : vector<64x128xf32> to vector<64xf32>
    %111 = vector.shape_cast %110 : vector<64xf32> to vector<64x1xf32>
    %112 = vector.broadcast %108 : vector<64x1xf32> to vector<64x64xf32>
    %113 = arith.mulf %112, %19 : vector<64x64xf32>
    %cst_32 = arith.constant dense<0.000000e+00> : vector<64xf32>
    %114 = vector.multi_reduction <add>, %113, %cst_32 [0] : vector<64x64xf32> to vector<64xf32>
    %115 = vector.shape_cast %114 : vector<64xf32> to vector<1x64xf32>
    %cst_33 = arith.constant 1.562500e-02 : f32
    %116 = vector.broadcast %cst_33 : f32 to vector<1x64xf32>
    %117 = arith.mulf %115, %116 : vector<1x64xf32>
    %118 = vector.broadcast %111 : vector<64x1xf32> to vector<64x64xf32>
    %119 = arith.mulf %118, %19 : vector<64x64xf32>
    %cst_34 = arith.constant dense<0.000000e+00> : vector<64xf32>
    %120 = vector.multi_reduction <add>, %119, %cst_34 [0] : vector<64x64xf32> to vector<64xf32>
    %121 = vector.shape_cast %120 : vector<64xf32> to vector<1x64xf32>
    %cst_35 = arith.constant 1.562500e-02 : f32
    %122 = vector.broadcast %cst_35 : f32 to vector<1x64xf32>
    %123 = arith.mulf %121, %122 : vector<1x64xf32>
    %124 = arith.mulf %117, %117 : vector<1x64xf32>
    %125 = arith.subf %123, %124 : vector<1x64xf32>
    %cst_36 = arith.constant 0.000000e+00 : f32
    %126 = vector.broadcast %cst_36 : f32 to vector<1x64xf32>
    %127 = arith.maximumf %125, %126 : vector<1x64xf32>
    %cst_37 = arith.constant 9.99999974E-6 : f32
    %128 = vector.broadcast %cst_37 : f32 to vector<1x64xf32>
    %129 = arith.addf %127, %128 : vector<1x64xf32>
    %130 = math.rsqrt %129 : vector<1x64xf32>
    %131 = arith.mulf %10, %130 : vector<1x64xf32>
    %132 = arith.mulf %117, %131 : vector<1x64xf32>
    %133 = arith.subf %11, %132 : vector<1x64xf32>
    %134 = arith.extf %3 : vector<8x64xbf16> to vector<8x64xf32>
    %135 = vector.broadcast %131 : vector<1x64xf32> to vector<8x64xf32>
    %136 = arith.mulf %134, %135 : vector<8x64xf32>
    %137 = arith.truncf %136 : vector<8x64xf32> to vector<8x64xbf16>
    %138 = arith.extf %3 : vector<8x64xbf16> to vector<8x64xf32>
    %139 = vector.broadcast %133 : vector<1x64xf32> to vector<8x64xf32>
    %140 = arith.mulf %138, %139 : vector<8x64xf32>
    %cst_38 = arith.constant dense<0.000000e+00> : vector<8xf32>
    %141 = vector.multi_reduction <add>, %140, %cst_38 [1] : vector<8x64xf32> to vector<8xf32>
    %142 = vector.shape_cast %141 : vector<8xf32> to vector<8x1xf32>
    %143 = arith.addf %142, %14 : vector<8x1xf32>
    %144 = arith.truncf %106 : vector<64x128xf32> to vector<64x128xbf16>
    %cst_39 = arith.constant dense<0.000000e+00> : vector<8x128xf32>
    %145 = tpu.matmul %137, %144, %cst_39 {dimension_numbers = #tpu.dot_dimension_numbers<[1], [0], [0], [1], [0, 0, 1, 1], [], []>} : vector<8x64xbf16>, vector<64x128xbf16>, vector<8x128xf32> -> vector<8x128xf32>
    %146 = vector.broadcast %143 : vector<8x1xf32> to vector<8x128xf32>
    %147 = arith.addf %145, %146 : vector<8x128xf32>
    %c0_40 = arith.constant 0 : index
    %c0_41 = arith.constant 0 : index
    %148 = vector.load %arg7[%c0_40, %c0_41] : memref<8x128xf32, #tpu.memory_space<vmem>>, vector<8x128xf32>
    tpu.vector_store %arg7[%c0_40, %c0_41], %147 {strides = array<i32>} : memref<8x128xf32, #tpu.memory_space<vmem>>, vector<8x128xf32>,
    return
  }
  func.func @transform_0(%arg0: i32) -> (i32, i32) {
    %c0_i32 = arith.constant 0 : i32
    %c0_i32_0 = arith.constant 0 : i32
    %c0_i32_1 = arith.constant 0 : i32
    return %c0_i32, %c0_i32_0 : i32, i32
  }
  func.func @transform_1(%arg0: i32) -> (i32, i32) {
    %c0_i32 = arith.constant 0 : i32
    %c0_i32_0 = arith.constant 0 : i32
    %c0_i32_1 = arith.constant 0 : i32
    return %c0_i32, %c0_i32_0 : i32, i32
  }
  func.func @transform_2(%arg0: i32) -> (i32, i32) {
    %c0_i32 = arith.constant 0 : i32
    %c0_i32_0 = arith.constant 0 : i32
    %c0_i32_1 = arith.constant 0 : i32
    return %c0_i32, %c0_i32_0 : i32, i32
  }
  func.func @transform_3(%arg0: i32) -> (i32, i32) {
    %c0_i32 = arith.constant 0 : i32
    %c0_i32_0 = arith.constant 0 : i32
    %c0_i32_1 = arith.constant 0 : i32
    return %c0_i32, %c0_i32_0 : i32, i32
  }
  func.func @transform_4(%arg0: i32) -> (i32, i32) {
    %c0_i32 = arith.constant 0 : i32
    %c0_i32_0 = arith.constant 0 : i32
    %c0_i32_1 = arith.constant 0 : i32
    return %c0_i32, %c0_i32_0 : i32, i32
  }
  func.func @transform_5(%arg0: i32) -> (i32, i32) {
    %c0_i32 = arith.constant 0 : i32
    %c0_i32_0 = arith.constant 0 : i32
    %c0_i32_1 = arith.constant 0 : i32
    return %c0_i32, %c0_i32_0 : i32, i32
  }
  func.func @transform_6(%arg0: i32) -> (i32, i32) {
    %c0_i32 = arith.constant 0 : i32
    %c0_i32_0 = arith.constant 0 : i32
    %c0_i32_1 = arith.constant 0 : i32
    return %c0_i32, %c0_i32_0 : i32, i32
  }
}

</mosaic_0001>

<bundles_post_ra>
// kernel: tpu_custom_call.1
= control target key start
LH: loop header
LB: loop body
LE: loop exit
PB: predicated region body
PF: predicated region fallthrough
CT: control target
= control target key end

     0   :  { %vm105_vm0 = vcmask 130048   ;;  %s1474_s0 = inlined_call_operand.vmem [shape: f32[128,16], index: 0, kind: input, shape index: {}]   ;;  %s1475_s1 = inlined_call_operand.vmem [shape: bf16[64,16], index: 1, kind: input, shape index: {}]   ;;  %s1476_s2 = inlined_call_operand.vmem [shape: bf16[64,64], index: 2, kind: input, shape index: {}]   ;;  %s1477_s3 = inlined_call_operand.vmem [shape: bf16[8,64], index: 3, kind: input, shape index: {}]   ;;  %s1478_s4 = inlined_call_operand.vmem [shape: f32[8,64], index: 4, kind: input, shape index: {}]   ;;  %s1479_s5 = inlined_call_operand.vmem [shape: f32[64,4], index: 5, kind: input, shape index: {}]   ;;  %s1480_s6 = inlined_call_operand.hbm [shape: f32[8,128], index: 6, kind: output, shape index: {}]  }
   0x1   :  { %v1026_v0 = vld [vmem:[%s1474_s0] sm:$0xff]  ;;  %v1031_v1 = vld [vmem:[%s1474_s0 + $0x8] sm:$0xff]  ;;  %v1036_v2 = vld [vmem:[%s1474_s0 + $0x10] sm:$0xff] }
   0x2   :  { %v1041_v3 = vld [vmem:[%s1474_s0 + $0x18] sm:$0xff]  ;;  %v106_v4 = vsel %vm105_vm0, %v1026_v0, 0.0  ;;  %v107_v5 = vsel %vm105_vm0, %v1031_v1, 0.0  ;;  %v109_v6 = vsel %vm105_vm0, %v1036_v2, 0.0  ;;  %v1052_v7 = vld [vmem:[%s1474_s0 + $0x20] sm:$0xff]  ;;  %v1059_v10 = vld [vmem:[%s1474_s0 + $0x28] sm:$0xff]  ;;  %v144_v15 = vmul.f32 %v1026_v0, %v1026_v0 }
   0x3   :  { %v108_v8 = vadd.f32 %v107_v5, %v106_v4  ;;  %v111_v9 = vsel %vm105_vm0, %v1041_v3, 0.0  ;;  %v113_v12 = vsel %vm105_vm0, %v1052_v7, 0.0  ;;  %v1066_v13 = vld [vmem:[%s1474_s0 + $0x30] sm:$0xff]  ;;  %v145_v16 = vmul.f32 %v1031_v1, %v1031_v1 }
   0x5   :  { %v110_v11 = vadd.f32 %v109_v6, %v108_v8 }
   0x7   :  { %v112_v14 = vadd.f32 %v111_v9, %v110_v11 }
   0x8   :  { %11 = vsyncpa [#allocation3], 0  ;;  %v115_v17 = vsel %vm105_vm0, %v1059_v10, 0.0  ;;  %v146_v18 = vmul.f32 %v1036_v2, %v1036_v2  ;;  %v1079_v19 = vld [vmem:[%s1474_s0 + $0x38] sm:$0xff]  ;;  %v147_v21 = vmul.f32 %v1041_v3, %v1041_v3  ;;  %v117_v22 = vsel %vm105_vm0, %v1066_v13, 0.0  ;;  %v1088_v23 = vld [vmem:[%s1474_s0 + $0x40] sm:$0xff] }
   0x9   :  { %v114_v20 = vadd.f32 %v113_v12, %v112_v14  ;;  %v148_v25 = vmul.f32 %v1052_v7, %v1052_v7  ;;  %v160_v26 = vsel %vm105_vm0, %v144_v15, 0.0  ;;  %v161_v27 = vsel %vm105_vm0, %v145_v16, 0.0  ;;  %v1100_v31 = vld [vmem:[%s1474_s0 + $0x48] sm:$0xff]  ;;  %v1110_v37 = vld [vmem:[%s1474_s0 + $0x50] sm:$0xff]  ;;  %v1120_v43 = vld [vmem:[%s1474_s0 + $0x58] sm:$0xff]  ;;  %s856_s15 = sshll.u32 %s1480_s6, 4  ;;  %s857_s15 = int_to_ptr.hbm [resolvable:$true] %s856_s15 }
   0xa   :  { %v119_v28 = vsel %vm105_vm0, %v1079_v19, 0.0  ;;  %v162_v29 = vadd.f32 %v161_v27, %v160_v26  ;;  %v163_v30 = vsel %vm105_vm0, %v146_v18, 0.0  ;;  %v149_v33 = vmul.f32 %v1059_v10, %v1059_v10  ;;  %v1130_v49 = vld [vmem:[%s1474_s0 + $0x60] sm:$0xff]  ;;  %v1140_v55 = vld [vmem:[%s1474_s0 + $0x68] sm:$0xff]  ;;  %v1150_v61 = vld [vmem:[%s1474_s0 + $0x70] sm:$0xff] }
   0xb   :  { %v116_v24 = vadd.f32 %v115_v17, %v114_v20  ;;  %v165_v34 = vsel %vm105_vm0, %v147_v21, 0.0  ;;  %v121_v35 = vsel %vm105_vm0, %v1088_v23, 0.0  ;;  %v150_v39 = vmul.f32 %v1066_v13, %v1066_v13  ;;  %v40_v8 = vld [vmem:[%s1474_s0 + $0x78] sm:$0xff] }
   0xc   :  { %v164_v36 = vadd.f32 %v163_v30, %v162_v29  ;;  %v167_v40 = vsel %vm105_vm0, %v148_v25, 0.0  ;;  %v123_v41 = vsel %vm105_vm0, %v1100_v31, 0.0  ;;  %v151_v45 = vmul.f32 %v1079_v19, %v1079_v19 }
   0xd   :  { %v118_v32 = vadd.f32 %v117_v22, %v116_v24  ;;  %v169_v46 = vsel %vm105_vm0, %v149_v33, 0.0  ;;  %v125_v47 = vsel %vm105_vm0, %v1110_v37, 0.0  ;;  %v152_v51 = vmul.f32 %v1088_v23, %v1088_v23 }
   0xe   :  { %v166_v42 = vadd.f32 %v165_v34, %v164_v36  ;;  %v171_v52 = vsel %vm105_vm0, %v150_v39, 0.0  ;;  %v127_v53 = vsel %vm105_vm0, %v1120_v43, 0.0  ;;  %v153_v57 = vmul.f32 %v1100_v31, %v1100_v31 }
   0xf   :  { %v120_v38 = vadd.f32 %v119_v28, %v118_v32  ;;  %v173_v58 = vsel %vm105_vm0, %v151_v45, 0.0  ;;  %v129_v59 = vsel %vm105_vm0, %v1130_v49, 0.0  ;;  %v154_v63 = vmul.f32 %v1110_v37, %v1110_v37 }
  0x10   :  { %v168_v48 = vadd.f32 %v167_v40, %v166_v42  ;;  %v175_v4 = vsel %vm105_vm0, %v152_v51, 0.0  ;;  %v131_v5 = vsel %vm105_vm0, %v1140_v55, 0.0  ;;  %v155_v11 = vmul.f32 %v1120_v43, %v1120_v43 }
  0x11   :  { %v122_v44 = vadd.f32 %v121_v35, %v120_v38  ;;  %v177_v12 = vsel %vm105_vm0, %v153_v57, 0.0  ;;  %v133_v14 = vsel %vm105_vm0, %v1150_v61, 0.0  ;;  %v156_v17 = vmul.f32 %v1130_v49, %v1130_v49 }
  0x12   :  { %v170_v54 = vadd.f32 %v169_v46, %v168_v48  ;;  %v179_v18 = vsel %vm105_vm0, %v154_v63, 0.0  ;;  %v135_v20 = vsel %vm105_vm0, %v40_v8, 0.0  ;;  %v157_v24 = vmul.f32 %v1140_v55, %v1140_v55 }
  0x13   :  { %v124_v50 = vadd.f32 %v123_v41, %v122_v44  ;;  %v181_v25 = vsel %vm105_vm0, %v155_v11, 0.0  ;;  %v158_v28 = vmul.f32 %v1150_v61, %v1150_v61  ;;  %v183_v29 = vsel %vm105_vm0, %v156_v17, 0.0  ;;  %v1181_v11 = vld [vmem:[%s1478_s4] sm:$0xff] }
  0x14   :  { %v172_v60 = vadd.f32 %v171_v52, %v170_v54  ;;  %v159_v33 = vmul.f32 %v40_v8, %v40_v8  ;;  %v185_v34 = vsel %vm105_vm0, %v157_v24, 0.0  ;;  %vm457_vm8 = vcmask 523264  }
  0x15   :  { %v126_v56 = vadd.f32 %v125_v47, %v124_v50  ;;  %v187_v38 = vsel %vm105_vm0, %v158_v28, 0.0 }
  0x16   :  { %v174_v6 = vadd.f32 %v173_v58, %v172_v60  ;;  %v189_v41 = vsel %vm105_vm0, %v159_v33, 0.0 }
  0x17   :  { %v128_v62 = vadd.f32 %v127_v53, %v126_v56 }
  0x18   :  { %v176_v15 = vadd.f32 %v175_v4, %v174_v6 }
  0x19   :  { %v130_v9 = vadd.f32 %v129_v59, %v128_v62 }
  0x1a   :  { %v178_v21 = vadd.f32 %v177_v12, %v176_v15 }
  0x1b   :  { %v132_v16 = vadd.f32 %v131_v5, %v130_v9 }
  0x1c   :  { %v180_v26 = vadd.f32 %v179_v18, %v178_v21  ;;  %v286_v18 = vpack.c.bf16 %v1140_v55, %v1130_v49  ;;  %v1194_v21 = vld [vmem:[%s1475_s1 + $0x10] sm:$0xff]  }
  0x1d   :  { %v134_v22 = vadd.f32 %v133_v14, %v132_v16  ;;  %v287_v14 = vpack.c.bf16 %v40_v8, %v1150_v61  ;;  %v1199_v61 = vld [vmem:[%s1475_s1 + $0x8] sm:$0xff]   ;;  %v1204_v8 = vld [vmem:[%s1475_s1] sm:$0xff]   ;;  %v893_v55 = vunpack.c.l.bf16 %v1194_v21  ;;  %v894_v28 = vunpack.c.h.bf16 %v1194_v21 }
  0x1e   :  { %v182_v30 = vadd.f32 %v181_v25, %v180_v26  ;;  %v359_v49 = vsel %vm105_vm0, %v286_v18, 0  ;;  %v889_v25 = vunpack.c.l.bf16 %v1199_v61  ;;  %v885_v26 = vunpack.c.l.bf16 %v1204_v8 }
  0x1f   :  { %v136_v27 = vadd.f32 %v135_v20, %v134_v22  ;;  %v362_v16 = vsel %vm105_vm0, %v287_v14, 0  ;;  %v983_v14 = vmov 0  }
  0x20   :  { %v184_v35 = vadd.f32 %v183_v29, %v182_v30  ;;  %364 = vmatpush.bf16.xpose.msra.mxu0 %v362_v16  ;;  %922 = vmatpush.bf16.xpose.msra.mxu3 %v362_v16  ;;  %v285_v29 = vpack.c.bf16 %v1120_v43, %v1110_v37 }
  0x21   :  { %v137_v32 = vrot.slane %v136_v27, 4  ;;  %921 = vmatpush.bf16.xpose.msra.mxu2 %v362_v16  ;;  %944 = vset.pattern.permute.xlu1 %v983_v14  ;;  %v1268_v16 = vld [vmem:[%s1479_s5] sm:$0xff] }
  0x22   :  { %v186_v39 = vadd.f32 %v185_v34, %v184_v35  ;;  %v890_v34 = vunpack.c.h.bf16 %v1199_v61  ;;  %v886_v35 = vunpack.c.h.bf16 %v1204_v8  ;;  %v356_v43 = vsel %vm105_vm0, %v285_v29, 0  ;;  %942 = vset.pattern.permute.xlu2 %v983_v14  ;;  %943 = vset.pattern.permute.xlu0 %v983_v14  ;;  %v1275_v8 = vld [vmem:[%s1479_s5 + $0x28] sm:$0xff]  ;;  %v1293_v29 = vld [vmem:[%s1479_s5 + $0x38] sm:$0xff] }
  0x23   :  { %v138_v36 = vadd.f32 %v137_v32, %v136_v27 }
  0x24   :  { %v188_v42 = vadd.f32 %v187_v38, %v186_v39 }
  0x25   :  { %v139_v40 = vrot.slane %v138_v36, 2 }
  0x26   :  { %v190_v45 = vadd.f32 %v189_v41, %v188_v42  ;;  %v917_v42 = vld [vmem:[%s1475_s1 + $0x18] sm:$0xff]  }
  0x27   :  { %v140_v44 = vadd.f32 %v139_v40, %v138_v36 }
  0x28   :  { %v191_v47 = vrot.slane %v190_v45, 4  ;;  %365 = vmatpush.bf16.xpose.msra.mxu0 %v359_v49  ;;  %924 = vmatpush.bf16.xpose.msra.mxu3 %v359_v49 }
  0x29   :  { %v141_v46 = vrot.slane %v140_v44, 1  ;;  %923 = vmatpush.bf16.xpose.msra.mxu2 %v359_v49  ;;  %v1285_v49 = vld [vmem:[%s1479_s5 + $0x8] sm:$0xff] }
  0x2a   :  { %v192_v50 = vadd.f32 %v191_v47, %v190_v45  ;;  %v898_v47 = vunpack.c.h.bf16 %v917_v42 }
  0x2b   :  { %v142_v48 = vadd.f32 %v141_v46, %v140_v44  ;;  %v284_v44 = vpack.c.bf16 %v1100_v31, %v1088_v23  ;;  %v283_v23 = vpack.c.bf16 %v1079_v19, %v1066_v13  ;;  %v281_v13 = vpack.c.bf16 %v1041_v3, %v1036_v2 }
  0x2c   :  { %v193_v51 = vrot.slane %v192_v50, 2 }
  0x2d   :  { %v143_v52 = vmul.f32 0.015625, %v142_v48  ;;  %v344_v19 = vsel %vm105_vm0, %v281_v13, 0 }
  0x2e   :  { %v194_v53 = vadd.f32 %v193_v51, %v192_v50  ;;  %v897_v50 = vunpack.c.l.bf16 %v917_v42  ;;  %v353_v51 = vsel %vm105_vm0, %v284_v44, 0  ;;  %v984_v42 = vmov 0.0  }
  0x2f   :  { %v198_v57 = vmul.f32 %v143_v52, %v143_v52 }
  0x30   :  { %v195_v54 = vrot.slane %v194_v53, 1  ;;  %366 = vmatpush.bf16.xpose.msra.mxu0 %v356_v43  ;;  %926 = vmatpush.bf16.xpose.msra.mxu3 %v356_v43 }
  0x31   :  { %925 = vmatpush.bf16.xpose.msra.mxu2 %v356_v43 }
  0x32   :  { %v196_v56 = vadd.f32 %v195_v54, %v194_v53 }
  0x34   :  { %v197_v58 = vmul.f32 0.015625, %v196_v56  ;;  %v350_v56 = vsel %vm105_vm0, %v283_v23, 0 }
  0x36   :  { %v199_v59 = vsub.f32 %v197_v58, %v198_v57  ;;  %v282_v57 = vpack.c.bf16 %v1059_v10, %v1052_v7 }
  0x38   :  { %v200_v60 = vmax.f32 %v199_v59, 0.0  ;;  %367 = vmatpush.bf16.xpose.msra.mxu0 %v353_v51  ;;  %928 = vmatpush.bf16.xpose.msra.mxu3 %v353_v51  ;;  %v347_v58 = vsel %vm105_vm0, %v282_v57, 0  ;;  %v280_v59 = vpack.c.bf16 %v1031_v1, %v1026_v0 }
  0x39   :  { %927 = vmatpush.bf16.xpose.msra.mxu2 %v353_v51 }
  0x3a   :  { %v201_v62 = vadd.f32 1e-05, %v200_v60  ;;  %v341_v7 = vsel %vm105_vm0, %v280_v59, 0 }
  0x3c   :  { %950 = vrsqrt.f32 %v201_v62  ;;  %vm208_vm1 = vweird.f32 %v201_v62 }
  0x40   :  { %368 = vmatpush.bf16.xpose.msra.mxu0 %v350_v56  ;;  %930 = vmatpush.bf16.xpose.msra.mxu3 %v350_v56 }
  0x41   :  { %929 = vmatpush.bf16.xpose.msra.mxu2 %v350_v56 }
  0x42   :  { %v951_v63 = vpop.eup %950 }
  0x43   :  { %v203_v4 = vmul.f32 %v951_v63, %v201_v62  ;;  %vm209_vm2 = vweird.f32 %v951_v63 }
  0x44   :  { %vm210_vm3 = vmor %vm208_vm1, %vm209_vm2 }
  0x45   :  { %v204_v5 = vmul.f32 %v951_v63, %v203_v4 }
  0x47   :  { %v205_v6 = vmul.f32 0.5, %v204_v5 }
  0x48   :  { %369 = vmatpush.bf16.xpose.msra.mxu0 %v347_v58  ;;  %932 = vmatpush.bf16.xpose.msra.mxu3 %v347_v58 }
  0x49   :  { %v206_v9 = vsub.f32 1.5, %v205_v6  ;;  %931 = vmatpush.bf16.xpose.msra.mxu2 %v347_v58 }
  0x4b   :  { %v207_v12 = vmul.f32 %v951_v63, %v206_v9 }
  0x4d   :  { %v211_v15 = vsel %vm210_vm3, %v951_v63, %v207_v12 }
  0x4e   :  { %v1186_v17 = vmul.f32 %v211_v15, %v1181_v11  ;;  %v1263_v15 = vld [vmem:[%s1479_s5 + $0x10] sm:$0xff] }
  0x50   :  { %v213_v20 = vmul.f32 %v1186_v17, %v143_v52  ;;  %370 = vmatpush.bf16.xpose.msra.mxu0 %v344_v19  ;;  %934 = vmatpush.bf16.xpose.msra.mxu3 %v344_v19  ;;  %v226_v60 = vperm.slane %v1186_v17, 0 }
  0x51   :  { %933 = vmatpush.bf16.xpose.msra.mxu2 %v344_v19 }
  0x52   :  { %v215_v22 = vrot.slane %v213_v20, 7  ;;  %v231_v10 = vmul.f32 %v893_v55, %v226_v60  ;;  %v227_v62 = vmul.f32 %v885_v26, %v226_v60  ;;  %v228_v2 = vmul.f32 %v886_v35, %v226_v60 }
  0x53   :  { %v232_v3 = vmul.f32 %v894_v28, %v226_v60  ;;  %v229_v63 = vmul.f32 %v889_v25, %v226_v60  ;;  %v230_v4 = vmul.f32 %v890_v34, %v226_v60  ;;  %v233_v6 = vmul.f32 %v897_v50, %v226_v60 }
  0x54   :  { %v217_v24 = vsub.f32 %v1181_v11, %v215_v22  ;;  %v235_v0 = vpack.c.bf16 %v228_v2, %v227_v62  ;;  %v234_v9 = vmul.f32 %v898_v47, %v226_v60  ;;  %v1280_v22 = vld [vmem:[%s1479_s5 + $0x18] sm:$0xff] }
  0x55   :  { %v237_v1 = vpack.c.bf16 %v232_v3, %v231_v10  ;;  %v236_v5 = vpack.c.bf16 %v230_v4, %v229_v63 }
  0x56   :  { %v239_v27 = vperm.slane %v217_v24, 1  ;;  %v238_v12 = vpack.c.bf16 %v234_v9, %v233_v6 }
  0x58   :  { %v244_v30 = vmul.f32 %v893_v55, %v239_v27  ;;  %v242_v32 = vmul.f32 %v889_v25, %v239_v27  ;;  %v240_v33 = vmul.f32 %v885_v26, %v239_v27  ;;  %v245_v39 = vmul.f32 %v894_v28, %v239_v27  ;;  %371 = vmatpush.bf16.xpose.msra.mxu0 %v341_v7 }
  0x59   :  { %v243_v40 = vmul.f32 %v890_v34, %v239_v27  ;;  %v241_v41 = vmul.f32 %v886_v35, %v239_v27  ;;  %v247_v52 = vmul.f32 %v898_v47, %v239_v27  ;;  %v246_v53 = vmul.f32 %v897_v50, %v239_v27  ;;  %936 = vmatpush.bf16.xpose.msra.mxu3 %v341_v7  ;;  %v1305_v35 = vld [vmem:[%s1479_s5 + $0x30] sm:$0xff] }
  0x5a   :  { %v260_v36 = vsel %vm105_vm0, %v244_v30, 0.0  ;;  %v254_v38 = vsel %vm105_vm0, %v242_v32, 0.0  ;;  %v248_v37 = vsel %vm105_vm0, %v240_v33, 0.0  ;;  %v263_v45 = vsel %vm105_vm0, %v245_v39, 0.0  ;;  %935 = vmatpush.bf16.xpose.msra.mxu2 %v341_v7  ;;  %v1298_v30 = vld [vmem:[%s1479_s5 + $0x20] sm:$0xff] }
  0x5b   :  { %261 = vadd.xlane.f32.xlu2 %v260_v36  ;;  %255 = vadd.xlane.f32.xlu1 %v254_v38  ;;  %v257_v46 = vsel %vm105_vm0, %v243_v40, 0.0  ;;  %v251_v48 = vsel %vm105_vm0, %v241_v41, 0.0  ;;  %v269_v31 = vsel %vm105_vm0, %v247_v52, 0.0  ;;  %v266_v54 = vsel %vm105_vm0, %v246_v53, 0.0 }
  0x5c   :  { %249 = vadd.xlane.f32.xlu0 %v248_v37  ;;  %v67_v37 = vlaneseq }
  0x5e   :  { %v1309_v43 = vand.u32 127, %v67_v37 }
  0x5f   :  { %874 = vmatmul.msk.bf16.vlgmr.msra.gmra.mxu0 %vm105_vm0, %v235_v0 }
  0x60   :  { %876 = vmatmul.msk.bf16.vlgmr.msra.gmra.mxu3 %vm105_vm0, %v237_v1  ;;  %vm102_vm4 = vcmp.lt.s32.totalorder %v1309_v43, 64 }
  0x61   :  { %875 = vmatmul.msk.bf16.vlgmr.msra.gmra.mxu2 %vm105_vm0, %v236_v5  ;;  %v1313_v44 = vsel %vm102_vm4, 1.0, %v984_v42 }
  0x63   :  { %264 = vadd.xlane.f32.xlu2 %v263_v45  ;;  %258 = vadd.xlane.f32.xlu1 %v257_v46 }
  0x64   :  { %252 = vadd.xlane.f32.xlu0 %v251_v48 }
  0x6b   :  { %270 = vadd.xlane.f32.xlu1 %v269_v31 }
  0x6c   :  { %267 = vadd.xlane.f32.xlu0 %v266_v54 }
  0x70   :  { %877 = vmatmul.msk.bf16.gmra.mxu3 %vm105_vm0, %v238_v12 }
  0xce   :  { %v262_v17 = vpop.xlane.xlu2 %261  ;;  %v256_v18 = vpop.xlane.xlu1 %255 }
  0xcf   :  { %v274_v20 = vadd.f32 %v256_v18, %v1263_v15  ;;  %v250_v21 = vpop.xlane.xlu0 %249  ;;  %v276_v34 = vadd.f32 %v262_v17, %v1298_v30 }
  0xd0   :  { %v272_v61 = vadd.f32 %v250_v21, %v1268_v16 }
  0xd1   :  { %300 = vperm.xlu1 %944, %v274_v20  }
  0xd2   :  { %290 = vperm.xlu2 %942, %v272_v61  }
  0xd6   :  { %v265_v55 = vpop.xlane.xlu2 %264  ;;  %v259_v24 = vpop.xlane.xlu1 %258 }
  0xd7   :  { %v277_v25 = vadd.f32 %v265_v55, %v1275_v8  ;;  %v275_v26 = vadd.f32 %v259_v24, %v1280_v22  ;;  %v253_v27 = vpop.xlane.xlu0 %252 }
  0xd8   :  { %v273_v28 = vadd.f32 %v253_v27, %v1285_v49 }
  0xd9   :  { %315 = vperm.xlu1 %944, %v277_v25  }
  0xda   :  { %305 = vperm.xlu2 %942, %v275_v26   ;;  %295 = vperm.xlu0 %943, %v273_v28  }
  0xdc   :  { %v373_v39 = vpop.f32.mrf.mxu0 }
  0xde   :  { %v271_v32 = vpop.xlane.xlu1 %270 }
  0xdf   :  { %v279_v33 = vadd.f32 %v271_v32, %v1293_v29  ;;  %v268_v36 = vpop.xlane.xlu0 %267 }
  0xe0   :  { %v278_v38 = vadd.f32 %v268_v36, %v1305_v35 }
  0xe1   :  { %325 = vperm.xlu1 %944, %v279_v33  }
  0xe2   :  { %310 = vperm.xlu2 %942, %v276_v34  }
  0xe3   :  { %v383_v48 = vpop.f32.mrf.mxu3 }
  0xe4   :  { %v378_v50 = vpop.f32.mrf.mxu2  ;;  %v375_v7 = vpop.f32.mrf.mxu0 }
  0xea   :  { %320 = vperm.xlu2 %942, %v278_v38  }
  0xeb   :  { %v385_v23 = vpop.f32.mrf.mxu3 }
  0xec   :  { %v380_v57 = vpop.f32.mrf.mxu2 }
  0xf3   :  { %v388_v59 = vpop.f32.mrf.mxu3 }
  0xfb   :  { %v390_v6 = vpop.f32.mrf.mxu3 }
 0x12c   :  { %v291_v40 = vpop.permute.xlu2 %290 }
 0x12d   :  { %v374_v41 = vadd.f32 %v373_v39, %v291_v40 }
 0x12f   :  { %v393_v45 = vmax.f32 %v374_v41, 0.0  ;;  %v68_v41 = vshrl.u32 %v67_v37, 7 }
 0x131   :  { %v401_v46 = vmul.f32 %v1313_v44, %v393_v45  ;;  %v69_v45 = vadd.s32 8, %v68_v41  ;;  %vm78_vm5 = vcmp.eq.s32.totalorder %v68_v41, %v1309_v43 }
 0x133   :  { %409 = vadd.xlane.f32.xlu0 %v401_v46  ;;  %v425_v28 = vmul.f32 %v401_v46, %v401_v46  ;;  %vm79_vm6 = vcmp.eq.s32.totalorder %v69_v45, %v1309_v43 }
 0x134   :  { %v306_v47 = vpop.permute.xlu2 %305 }
 0x135   :  { %v381_v19 = vadd.f32 %v380_v57, %v306_v47  ;;  %v70_v47 = vadd.s32 16, %v68_v41 }
 0x137   :  { %v396_v10 = vmax.f32 %v381_v19, 0.0  ;;  %vm80_vm7 = vcmp.eq.s32.totalorder %v70_v47, %v1309_v43  ;;  %v73_v19 = vadd.s32 40, %v68_v41 }
 0x138   :  { %v1335_v37 = vsel %vm80_vm7, 1.0, %v984_v42 }
 0x139   :  { %v404_v4 = vmul.f32 %v1313_v44, %v396_v10  ;;  %vm83_vm11 = vcmp.eq.s32.totalorder %v73_v19, %v1309_v43 }
 0x13b   :  { %v428_v27 = vmul.f32 %v404_v4, %v404_v4 }
 0x13c   :  { %v311_v51 = vpop.permute.xlu2 %310 }
 0x13d   :  { %v384_v52 = vadd.f32 %v383_v48, %v311_v51  ;;  %v71_v51 = vadd.s32 24, %v68_v41 }
 0x13f   :  { %v397_v53 = vmax.f32 %v384_v52, 0.0  ;;  %v1331_v52 = vsel %vm79_vm6, 1.0, %v984_v42  ;;  %vm81_vm9 = vcmp.eq.s32.totalorder %v71_v51, %v1309_v43 }
 0x141   :  { %v405_v31 = vmul.f32 %v1313_v44, %v397_v53 }
 0x143   :  { %417 = vadd.xlane.f32.xlu0 %v405_v31  ;;  %v301_v54 = vpop.permute.xlu1 %300  ;;  %v429_v25 = vmul.f32 %v405_v31, %v405_v31 }
 0x144   :  { %v379_v56 = vadd.f32 %v378_v50, %v301_v54  ;;  %v321_v2 = vpop.permute.xlu2 %320 }
 0x145   :  { %v389_v0 = vadd.f32 %v388_v59, %v321_v2  ;;  %v1343_v59 = vsel %vm81_vm9, 1.0, %v984_v42 }
 0x146   :  { %v395_v58 = vmax.f32 %v379_v56, 0.0 }
 0x147   :  { %v399_v14 = vmax.f32 %v389_v0, 0.0  ;;  %v75_v0 = vadd.s32 56, %v68_v41 }
 0x148   :  { %v403_v13 = vmul.f32 %v1313_v44, %v395_v58 }
 0x149   :  { %v407_v21 = vmul.f32 %v1313_v44, %v399_v14  ;;  %vm85_vm13 = vcmp.eq.s32.totalorder %v75_v0, %v1309_v43 }
 0x14a   :  { %413 = vadd.xlane.f32.xlu1 %v403_v13  ;;  %v593_v32 = vpack.c.bf16 %v404_v4, %v403_v13  ;;  %v427_v36 = vmul.f32 %v403_v13, %v403_v13 }
 0x14b   :  { %v316_v60 = vpop.permute.xlu1 %315  ;;  %v431_v34 = vmul.f32 %v407_v21, %v407_v21 }
 0x14c   :  { %v296_v62 = vpop.permute.xlu0 %295  ;;  %v386_v1 = vadd.f32 %v385_v23, %v316_v60 }
 0x14d   :  { %v376_v3 = vadd.f32 %v375_v7, %v296_v62 }
 0x14e   :  { %v398_v18 = vmax.f32 %v386_v1, 0.0  ;;  %v1353_v1 = vsel %vm83_vm11, 1.0, %v984_v42 }
 0x14f   :  { %v394_v63 = vmax.f32 %v376_v3, 0.0 }
 0x150   :  { %v406_v55 = vmul.f32 %v1313_v44, %v398_v18 }
 0x151   :  { %v402_v5 = vmul.f32 %v1313_v44, %v394_v63 }
 0x152   :  { %415 = vadd.xlane.f32.xlu1 %v404_v4  ;;  %v594_v26 = vpack.c.bf16 %v406_v55, %v405_v31  ;;  %v430_v38 = vmul.f32 %v406_v55, %v406_v55  ;;  %v72_v31 = vadd.s32 32, %v68_v41  ;;  %v74_v4 = vadd.s32 48, %v68_v41 }
 0x153   :  { %411 = vadd.xlane.f32.xlu2 %v402_v5  ;;  %v326_v9 = vpop.permute.xlu1 %325  ;;  %v426_v12 = vmul.f32 %v402_v5, %v402_v5  ;;  %v592_v33 = vpack.c.bf16 %v402_v5, %v401_v46  ;;  %v1327_v46 = vsel %vm78_vm5, 1.0, %v984_v42 }
 0x154   :  { %v391_v17 = vadd.f32 %v390_v6, %v326_v9  ;;  %vm82_vm10 = vcmp.eq.s32.totalorder %v72_v31, %v1309_v43  ;;  %vm84_vm12 = vcmp.eq.s32.totalorder %v74_v4, %v1309_v43 }
 0x155   :  { %435 = vadd.xlane.f32.xlu0 %v426_v12  ;;  %v1350_v2 = vsel %vm82_vm10, 1.0, %v984_v42 }
 0x156   :  { %v400_v20 = vmax.f32 %v391_v17, 0.0 }
 0x158   :  { %v408_v61 = vmul.f32 %v1313_v44, %v400_v20  ;;  %v1362_v20 = vsel %vm84_vm12, 1.0, %v984_v42 }
 0x15a   :  { %421 = vadd.xlane.f32.xlu1 %v407_v21  ;;  %v595_v24 = vpack.c.bf16 %v408_v61, %v407_v21  ;;  %v432_v39 = vmul.f32 %v408_v61, %v408_v61 }
 0x15b   :  { %419 = vadd.xlane.f32.xlu2 %v406_v55  ;;  %v1365_v55 = vsel %vm85_vm13, 1.0, %v984_v42 }
 0x15c   :  { %652 = vmatpush.bf16.msra.mxu1 %v595_v24 }
 0x15d   :  { %441 = vadd.xlane.f32.xlu0 %v429_v25 }
 0x160   :  { %653 = vmatpush.bf16.msra.mxu1 %v594_v26 }
 0x162   :  { %439 = vadd.xlane.f32.xlu1 %v428_v27 }
 0x163   :  { %433 = vadd.xlane.f32.xlu2 %v425_v28 }
 0x164   :  { %654 = vmatpush.bf16.msra.mxu1 %v593_v32 }
 0x165   :  { %423 = vadd.xlane.f32.xlu0 %v408_v61 }
 0x168   :  { %655 = vmatpush.bf16.msra.mxu1 %v592_v33 }
 0x16a   :  { %445 = vadd.xlane.f32.xlu1 %v431_v34 }
 0x16b   :  { %437 = vadd.xlane.f32.xlu2 %v427_v36 }
 0x173   :  { %443 = vadd.xlane.f32.xlu2 %v430_v38 }
 0x17b   :  { %447 = vadd.xlane.f32.xlu2 %v432_v39 }
 0x1a6   :  { %v410_v40 = vpop.xlane.xlu0 %409 }
 0x1a7   :  { %v449_v53 = vmul.f32 %v1327_v46, %v410_v40 }
 0x1a9   :  { %v458_v57 = vsel %vm457_vm8, %v449_v53, 0.0 }
 0x1b6   :  { %v418_v48 = vpop.xlane.xlu0 %417 }
 0x1b7   :  { %v453_v6 = vmul.f32 %v1350_v2, %v418_v48 }
 0x1b9   :  { %v465_v18 = vsel %vm457_vm8, %v453_v6, 0.0 }
 0x1bd   :  { %v414_v50 = vpop.xlane.xlu1 %413 }
 0x1be   :  { %v451_v58 = vmul.f32 %v1335_v37, %v414_v50 }
 0x1c0   :  { %v461_v10 = vsel %vm457_vm8, %v451_v58, 0.0 }
 0x1c5   :  { %v416_v60 = vpop.xlane.xlu1 %415 }
 0x1c6   :  { %v412_v23 = vpop.xlane.xlu2 %411  ;;  %v452_v62 = vmul.f32 %v1343_v59, %v416_v60 }
 0x1c7   :  { %v450_v54 = vmul.f32 %v1331_v52, %v412_v23 }
 0x1c8   :  { %v436_v56 = vpop.xlane.xlu0 %435  ;;  %v463_v9 = vsel %vm457_vm8, %v452_v62, 0.0 }
 0x1c9   :  { %v459_v13 = vsel %vm457_vm8, %v450_v54, 0.0  ;;  %v481_v32 = vmul.f32 %v1331_v52, %v436_v56 }
 0x1ca   :  { %v460_v7 = vadd.f32 %v459_v13, %v458_v57 }
 0x1cb   :  { %v489_v40 = vsel %vm457_vm8, %v481_v32, 0.0 }
 0x1cc   :  { %v462_v3 = vadd.f32 %v461_v10, %v460_v7 }
 0x1cd   :  { %v422_v17 = vpop.xlane.xlu1 %421 }
 0x1ce   :  { %v420_v63 = vpop.xlane.xlu2 %419  ;;  %v464_v12 = vadd.f32 %v463_v9, %v462_v3  ;;  %v455_v26 = vmul.f32 %v1362_v20, %v422_v17 }
 0x1cf   :  { %v454_v14 = vmul.f32 %v1353_v1, %v420_v63 }
 0x1d0   :  { %v442_v5 = vpop.xlane.xlu0 %441  ;;  %v466_v21 = vadd.f32 %v465_v18, %v464_v12  ;;  %v469_v33 = vsel %vm457_vm8, %v455_v26, 0.0 }
 0x1d1   :  { %v467_v24 = vsel %vm457_vm8, %v454_v14, 0.0  ;;  %v484_v23 = vmul.f32 %v1350_v2, %v442_v5 }
 0x1d2   :  { %v468_v28 = vadd.f32 %v467_v24, %v466_v21 }
 0x1d3   :  { %v495_v19 = vsel %vm457_vm8, %v484_v23, 0.0 }
 0x1d4   :  { %v470_v38 = vadd.f32 %v469_v33, %v468_v28 }
 0x1d5   :  { %v440_v42 = vpop.xlane.xlu1 %439 }
 0x1d6   :  { %v434_v61 = vpop.xlane.xlu2 %433  ;;  %v483_v48 = vmul.f32 %v1343_v59, %v440_v42 }
 0x1d7   :  { %v480_v27 = vmul.f32 %v1327_v46, %v434_v61 }
 0x1d8   :  { %v424_v25 = vpop.xlane.xlu0 %423  ;;  %v493_v31 = vsel %vm457_vm8, %v483_v48, 0.0 }
 0x1d9   :  { %v456_v43 = vmul.f32 %v1365_v55, %v424_v25  ;;  %v488_v34 = vsel %vm457_vm8, %v480_v27, 0.0 }
 0x1da   :  { %v490_v45 = vadd.f32 %v489_v40, %v488_v34 }
 0x1db   :  { %v471_v36 = vsel %vm457_vm8, %v456_v43, 0.0 }
 0x1dc   :  { %v472_v47 = vadd.f32 %v471_v36, %v470_v38 }
 0x1dd   :  { %v446_v13 = vpop.xlane.xlu1 %445 }
 0x1de   :  { %v438_v39 = vpop.xlane.xlu2 %437  ;;  %v473_v53 = vrot.slane %v472_v47, 4  ;;  %v486_v10 = vmul.f32 %v1362_v20, %v446_v13 }
 0x1df   :  { %v482_v41 = vmul.f32 %v1335_v37, %v438_v39 }
 0x1e0   :  { %v474_v58 = vadd.f32 %v473_v53, %v472_v47  ;;  %v499_v4 = vsel %vm457_vm8, %v486_v10, 0.0 }
 0x1e1   :  { %v491_v50 = vsel %vm457_vm8, %v482_v41, 0.0 }
 0x1e2   :  { %v492_v51 = vadd.f32 %v491_v50, %v490_v45  ;;  %v475_v62 = vrot.slane %v474_v58, 2  ;;  %v900_v45 = vld [vmem:[%s1476_s2] sm:$0xff]  }
 0x1e3   :  { %v901_v50 = vunpack.c.l.bf16 %v900_v45 }
 0x1e4   :  { %v494_v54 = vadd.f32 %v493_v31, %v492_v51  ;;  %v476_v5 = vadd.f32 %v475_v62, %v474_v58  ;;  %v902_v51 = vunpack.c.h.bf16 %v900_v45  ;;  %v985_v45 = vmov 1  }
 0x1e5   :  { %947 = vset.pattern.permute.xlu1 %v985_v45  ;;  %946 = vset.pattern.permute.xlu0 %v985_v45 }
 0x1e6   :  { %v444_v56 = vpop.xlane.xlu2 %443  ;;  %v496_v7 = vadd.f32 %v495_v19, %v494_v54  ;;  %v477_v14 = vrot.slane %v476_v5, 1  ;;  %945 = vset.pattern.permute.xlu2 %v985_v45 }
 0x1e7   :  { %v485_v57 = vmul.f32 %v1353_v1, %v444_v56 }
 0x1e8   :  { %v478_v21 = vadd.f32 %v477_v14, %v476_v5 }
 0x1e9   :  { %v497_v60 = vsel %vm457_vm8, %v485_v57, 0.0  ;;  %v918_v57 = vld [vmem:[%s1476_s2 + $0x8] sm:$0xff]  }
 0x1ea   :  { %v498_v3 = vadd.f32 %v497_v60, %v496_v7  ;;  %v479_v25 = vmul.f32 0.015625, %v478_v21  ;;  %v905_v60 = vunpack.c.l.bf16 %v918_v57  ;;  %v920_v21 = vld [vmem:[%s1476_s2 + $0x18] sm:$0xff]  }
 0x1ec   :  { %v500_v6 = vadd.f32 %v499_v4, %v498_v3  ;;  %v510_v43 = vmul.f32 %v479_v25, %v479_v25  ;;  %v919_v3 = vld [vmem:[%s1476_s2 + $0x10] sm:$0xff]  }
 0x1ed   :  { %v909_v5 = vunpack.c.l.bf16 %v919_v3 }
 0x1ee   :  { %v448_v63 = vpop.xlane.xlu2 %447 }
 0x1ef   :  { %v487_v0 = vmul.f32 %v1365_v55, %v448_v63 }
 0x1f1   :  { %v501_v9 = vsel %vm457_vm8, %v487_v0, 0.0 }
 0x1f2   :  { %v502_v12 = vadd.f32 %v501_v9, %v500_v6  ;;  %v906_v6 = vunpack.c.h.bf16 %v918_v57 }
 0x1f4   :  { %v503_v17 = vrot.slane %v502_v12, 4 }
 0x1f6   :  { %v504_v18 = vadd.f32 %v503_v17, %v502_v12 }
 0x1f8   :  { %v505_v61 = vrot.slane %v504_v18, 2 }
 0x1fa   :  { %v506_v24 = vadd.f32 %v505_v61, %v504_v18 }
 0x1fc   :  { %v507_v26 = vrot.slane %v506_v24, 1 }
 0x1fe   :  { %v508_v27 = vadd.f32 %v507_v26, %v506_v24 }
 0x200   :  { %v509_v28 = vmul.f32 0.015625, %v508_v27  ;;  %v914_v27 = vunpack.c.h.bf16 %v920_v21 }
 0x202   :  { %v511_v32 = vsub.f32 %v509_v28, %v510_v43  ;;  %v913_v43 = vunpack.c.l.bf16 %v920_v21 }
 0x204   :  { %v512_v33 = vmax.f32 %v511_v32, 0.0 }
 0x206   :  { %v513_v34 = vadd.f32 1e-05, %v512_v33 }
 0x208   :  { %952 = vrsqrt.f32 %v513_v34  ;;  %vm520_vm15 = vweird.f32 %v513_v34 }
 0x20e   :  { %v953_v36 = vpop.eup %952 }
 0x20f   :  { %v515_v42 = vmul.f32 %v953_v36, %v513_v34  ;;  %vm521_vm14 = vweird.f32 %v953_v36 }
 0x210   :  { %vm522_vm0 = vmor %vm520_vm15, %vm521_vm14 }
 0x211   :  { %v516_v38 = vmul.f32 %v953_v36, %v515_v42 }
 0x213   :  { %v517_v39 = vmul.f32 0.5, %v516_v38 }
 0x215   :  { %v518_v40 = vsub.f32 1.5, %v517_v39 }
 0x217   :  { %v519_v41 = vmul.f32 %v953_v36, %v518_v40 }
 0x219   :  { %v523_v47 = vsel %vm522_vm0, %v953_v36, %v519_v41 }
 0x21a   :  { %v524_v48 = vmul.f32 %v523_v47, %v1181_v11 }
 0x21c   :  { %v525_v53 = vmul.f32 %v524_v48, %v479_v25  ;;  %v538_v23 = vperm.slane %v524_v48, 2 }
 0x21e   :  { %v527_v31 = vrot.slane %v525_v53, 7  ;;  %v539_v54 = vmul.f32 %v901_v50, %v538_v23  ;;  %v540_v56 = vmul.f32 %v902_v51, %v538_v23  ;;  %v541_v17 = vmul.f32 %v905_v60, %v538_v23 }
 0x21f   :  { %v542_v18 = vmul.f32 %v906_v6, %v538_v23  ;;  %v543_v36 = vmul.f32 %v909_v5, %v538_v23  ;;  %v545_v39 = vmul.f32 %v913_v43, %v538_v23  ;;  %v546_v40 = vmul.f32 %v914_v27, %v538_v23 }
 0x220   :  { %v529_v58 = vsub.f32 %v1181_v11, %v527_v31  ;;  %v547_v13 = vpack.c.bf16 %v540_v56, %v539_v54  ;;  %v910_v11 = vunpack.c.h.bf16 %v919_v3 }
 0x221   :  { %v548_v26 = vpack.c.bf16 %v542_v18, %v541_v17  ;;  %v550_v41 = vpack.c.bf16 %v546_v40, %v545_v39 }
 0x222   :  { %v551_v19 = vperm.slane %v529_v58, 3  ;;  %878 = vmatmul.msk.bf16.vlgmr.msra.gmra.mxu1 %vm457_vm8, %v547_v13  ;;  %v544_v42 = vmul.f32 %v910_v11, %v538_v23 }
 0x224   :  { %v554_v7 = vmul.f32 %v905_v60, %v551_v19  ;;  %v553_v10 = vmul.f32 %v902_v51, %v551_v19  ;;  %v552_v62 = vmul.f32 %v901_v50, %v551_v19  ;;  %v557_v9 = vmul.f32 %v910_v11, %v551_v19 }
 0x225   :  { %v556_v12 = vmul.f32 %v909_v5, %v551_v19  ;;  %v555_v14 = vmul.f32 %v906_v6, %v551_v19  ;;  %v559_v28 = vmul.f32 %v914_v27, %v551_v19  ;;  %v558_v32 = vmul.f32 %v913_v43, %v551_v19 }
 0x226   :  { %v566_v63 = vsel %vm457_vm8, %v554_v7, 0.0  ;;  %v563_v4 = vsel %vm457_vm8, %v553_v10, 0.0  ;;  %v560_v0 = vsel %vm457_vm8, %v552_v62, 0.0  ;;  %v575_v61 = vsel %vm457_vm8, %v557_v9, 0.0 }
 0x227   :  { %567 = vadd.xlane.f32.xlu2 %v566_v63  ;;  %564 = vadd.xlane.f32.xlu1 %v563_v4  ;;  %v572_v24 = vsel %vm457_vm8, %v556_v12, 0.0  ;;  %v569_v25 = vsel %vm457_vm8, %v555_v14, 0.0  ;;  %v581_v33 = vsel %vm457_vm8, %v559_v28, 0.0  ;;  %v578_v34 = vsel %vm457_vm8, %v558_v32, 0.0 }
 0x228   :  { %561 = vadd.xlane.f32.xlu0 %v560_v0  ;;  %v549_v38 = vpack.c.bf16 %v544_v42, %v543_v36 }
 0x22f   :  { %576 = vadd.xlane.f32.xlu2 %v575_v61  ;;  %573 = vadd.xlane.f32.xlu1 %v572_v24 }
 0x230   :  { %570 = vadd.xlane.f32.xlu0 %v569_v25 }
 0x232   :  { %879 = vmatmul.msk.bf16.gmra.mxu1 %vm457_vm8, %v548_v26 }
 0x237   :  { %582 = vadd.xlane.f32.xlu1 %v581_v33 }
 0x238   :  { %579 = vadd.xlane.f32.xlu0 %v578_v34 }
 0x242   :  { %880 = vmatmul.msk.bf16.gmra.mxu1 %vm457_vm8, %v549_v38 }
 0x252   :  { %881 = vmatmul.msk.bf16.gmra.mxu1 %vm457_vm8, %v550_v41 }
 0x29a   :  { %v568_v47 = vpop.xlane.xlu2 %567  ;;  %v565_v48 = vpop.xlane.xlu1 %564 }
 0x29b   :  { %v586_v50 = vadd.f32 %v568_v47, %v1263_v15  ;;  %v585_v51 = vadd.f32 %v565_v48, %v1285_v49  ;;  %v562_v53 = vpop.xlane.xlu0 %561 }
 0x29c   :  { %v584_v31 = vadd.f32 %v562_v53, %v1268_v16 }
 0x29d   :  { %608 = vperm.xlu1 %947, %v586_v50   ;;  %603 = vperm.xlu0 %946, %v585_v51  }
 0x29e   :  { %598 = vperm.xlu2 %945, %v584_v31  }
 0x29f   :  { %v657_v7 = vpop.f32.mrf.mxu1 }
 0x2a2   :  { %v574_v23 = vpop.xlane.xlu1 %573  ;;  %v577_v58 = vpop.xlane.xlu2 %576 }
 0x2a3   :  { %v588_v54 = vadd.f32 %v574_v23, %v1298_v30  ;;  %v571_v56 = vpop.xlane.xlu0 %570  ;;  %v589_v15 = vadd.f32 %v577_v58, %v1275_v8 }
 0x2a4   :  { %v587_v57 = vadd.f32 %v571_v56, %v1280_v22 }
 0x2a5   :  { %618 = vperm.xlu1 %947, %v588_v54  }
 0x2a6   :  { %613 = vperm.xlu2 %945, %v587_v57  }
 0x2a7   :  { %v659_v10 = vpop.f32.mrf.mxu1 }
 0x2aa   :  { %v583_v19 = vpop.xlane.xlu1 %582 }
 0x2ab   :  { %v580_v13 = vpop.xlane.xlu0 %579  ;;  %v591_v60 = vadd.f32 %v583_v19, %v1293_v29 }
 0x2ac   :  { %v590_v49 = vadd.f32 %v580_v13, %v1305_v35 }
 0x2ae   :  { %623 = vperm.xlu2 %945, %v589_v15   ;;  %628 = vperm.xlu1 %947, %v590_v49  }
 0x2af   :  { %v662_v30 = vpop.f32.mrf.mxu1 }
 0x2b6   :  { %633 = vperm.xlu2 %945, %v591_v60  }
 0x2b7   :  { %v664_v62 = vpop.f32.mrf.mxu1 }
 0x2bf   :  { %v667_v0 = vpop.f32.mrf.mxu1 }
 0x2c7   :  { %v669_v11 = vpop.f32.mrf.mxu1 }
 0x2cf   :  { %v672_v18 = vpop.f32.mrf.mxu1 }
 0x2d7   :  { %v674_v36 = vpop.f32.mrf.mxu1 }
 0x2f8   :  { %v599_v3 = vpop.permute.xlu2 %598 }
 0x2f9   :  { %v658_v22 = vadd.f32 %v657_v7, %v599_v3 }
 0x2fb   :  { %v677_v63 = vmax.f32 %v658_v22, 0.0 }
 0x2fd   :  { %v685_v4 = vmul.f32 %v1313_v44, %v677_v63 }
 0x2ff   :  { %693 = vadd.xlane.f32.xlu0 %v685_v4  ;;  %v709_v27 = vmul.f32 %v685_v4, %v685_v4 }
 0x300   :  { %v614_v8 = vpop.permute.xlu2 %613 }
 0x301   :  { %v665_v24 = vadd.f32 %v664_v62, %v614_v8 }
 0x303   :  { %v680_v28 = vmax.f32 %v665_v24, 0.0 }
 0x305   :  { %v688_v42 = vmul.f32 %v1313_v44, %v680_v28 }
 0x307   :  { %v712_v58 = vmul.f32 %v688_v42, %v688_v42 }
 0x308   :  { %v624_v35 = vpop.permute.xlu2 %623 }
 0x309   :  { %v670_v5 = vadd.f32 %v669_v11, %v624_v35 }
 0x30b   :  { %v682_v6 = vmax.f32 %v670_v5, 0.0 }
 0x30d   :  { %v690_v9 = vmul.f32 %v1313_v44, %v682_v6 }
 0x30f   :  { %703 = vadd.xlane.f32.xlu0 %v690_v9  ;;  %v609_v29 = vpop.permute.xlu1 %608  ;;  %v604_v12 = vpop.permute.xlu0 %603  ;;  %v714_v31 = vmul.f32 %v690_v9, %v690_v9 }
 0x310   :  { %v663_v14 = vadd.f32 %v662_v30, %v609_v29  ;;  %v660_v17 = vadd.f32 %v659_v10, %v604_v12  ;;  %v634_v33 = vpop.permute.xlu2 %633 }
 0x311   :  { %v675_v39 = vadd.f32 %v674_v36, %v634_v33 }
 0x312   :  { %v679_v21 = vmax.f32 %v663_v14, 0.0  ;;  %v678_v61 = vmax.f32 %v660_v17, 0.0 }
 0x313   :  { %v684_v45 = vmax.f32 %v675_v39, 0.0 }
 0x314   :  { %v687_v25 = vmul.f32 %v1313_v44, %v679_v21  ;;  %v686_v26 = vmul.f32 %v1313_v44, %v678_v61 }
 0x315   :  { %v692_v51 = vmul.f32 %v1313_v44, %v684_v45 }
 0x316   :  { %697 = vadd.xlane.f32.xlu2 %v687_v25  ;;  %695 = vadd.xlane.f32.xlu1 %v686_v26  ;;  %v711_v40 = vmul.f32 %v687_v25, %v687_v25  ;;  %v710_v50 = vmul.f32 %v686_v26, %v686_v26  ;;  %v824_v13 = vpack.c.bf16 %v688_v42, %v687_v25 }
 0x317   :  { %717 = vadd.xlane.f32.xlu0 %v709_v27  ;;  %v619_v43 = vpop.permute.xlu1 %618  ;;  %v716_v57 = vmul.f32 %v692_v51, %v692_v51  ;;  %v823_v15 = vpack.c.bf16 %v686_v26, %v685_v4 }
 0x318   :  { %v668_v32 = vadd.f32 %v667_v0, %v619_v43 }
 0x31a   :  { %v681_v34 = vmax.f32 %v668_v32, 0.0 }
 0x31c   :  { %v689_v38 = vmul.f32 %v1313_v44, %v681_v34 }
 0x31e   :  { %699 = vadd.xlane.f32.xlu2 %v688_v42  ;;  %701 = vadd.xlane.f32.xlu1 %v689_v38  ;;  %v825_v54 = vpack.c.bf16 %v690_v9, %v689_v38  ;;  %v713_v56 = vmul.f32 %v689_v38, %v689_v38 }
 0x31f   :  { %721 = vadd.xlane.f32.xlu0 %v711_v40 }
 0x320   :  { %v629_v41 = vpop.permute.xlu1 %628 }
 0x321   :  { %v673_v47 = vadd.f32 %v672_v18, %v629_v41 }
 0x323   :  { %v683_v48 = vmax.f32 %v673_v47, 0.0 }
 0x325   :  { %v691_v53 = vmul.f32 %v1313_v44, %v683_v48 }
 0x326   :  { %719 = vadd.xlane.f32.xlu1 %v710_v50 }
 0x327   :  { %727 = vadd.xlane.f32.xlu0 %v714_v31  ;;  %705 = vadd.xlane.f32.xlu2 %v691_v53  ;;  %v826_v23 = vpack.c.bf16 %v692_v51, %v691_v53  ;;  %v715_v49 = vmul.f32 %v691_v53, %v691_v53 }
 0x329   :  { %839 = vmatpush.bf16.msrb.mxu2 %v826_v23 }
 0x32d   :  { %840 = vmatpush.bf16.msrb.mxu2 %v825_v54 }
 0x32e   :  { %725 = vadd.xlane.f32.xlu1 %v713_v56 }
 0x32f   :  { %731 = vadd.xlane.f32.xlu0 %v716_v57  ;;  %723 = vadd.xlane.f32.xlu2 %v712_v58 }
 0x331   :  { %841 = vmatpush.bf16.msrb.mxu2 %v824_v13 }
 0x335   :  { %842 = vmatpush.bf16.msrb.mxu2 %v823_v15 }
 0x336   :  { %707 = vadd.xlane.f32.xlu1 %v692_v51 }
 0x337   :  { %729 = vadd.xlane.f32.xlu2 %v715_v49 }
 0x372   :  { %v694_v44 = vpop.xlane.xlu0 %693 }
 0x373   :  { %v733_v63 = vmul.f32 %v1327_v46, %v694_v44 }
 0x375   :  { %v741_v4 = vsel %vm457_vm8, %v733_v63, 0.0 }
 0x382   :  { %v704_v19 = vpop.xlane.xlu0 %703 }
 0x383   :  { %v738_v33 = vmul.f32 %v1353_v1, %v704_v19 }
 0x385   :  { %v750_v45 = vsel %vm457_vm8, %v738_v33, 0.0 }
 0x389   :  { %v698_v60 = vpop.xlane.xlu2 %697  ;;  %v696_v7 = vpop.xlane.xlu1 %695 }
 0x38a   :  { %v718_v10 = vpop.xlane.xlu0 %717  ;;  %v734_v3 = vmul.f32 %v1331_v52, %v696_v7  ;;  %v735_v11 = vmul.f32 %v1335_v37, %v698_v60 }
 0x38b   :  { %v763_v29 = vmul.f32 %v1327_v46, %v718_v10 }
 0x38c   :  { %v742_v0 = vsel %vm457_vm8, %v734_v3, 0.0  ;;  %v744_v14 = vsel %vm457_vm8, %v735_v11, 0.0 }
 0x38d   :  { %v743_v9 = vadd.f32 %v742_v0, %v741_v4  ;;  %v771_v21 = vsel %vm457_vm8, %v763_v29, 0.0 }
 0x38f   :  { %v745_v61 = vadd.f32 %v744_v14, %v743_v9 }
 0x391   :  { %v700_v30 = vpop.xlane.xlu2 %699  ;;  %v702_v62 = vpop.xlane.xlu1 %701 }
 0x392   :  { %v722_v22 = vpop.xlane.xlu0 %721  ;;  %v736_v35 = vmul.f32 %v1343_v59, %v700_v30  ;;  %v737_v25 = vmul.f32 %v1350_v2, %v702_v62 }
 0x393   :  { %v765_v24 = vmul.f32 %v1335_v37, %v722_v22 }
 0x394   :  { %v746_v17 = vsel %vm457_vm8, %v736_v35, 0.0  ;;  %v748_v34 = vsel %vm457_vm8, %v737_v25, 0.0 }
 0x395   :  { %v747_v27 = vadd.f32 %v746_v17, %v745_v61  ;;  %v774_v46 = vsel %vm457_vm8, %v765_v24, 0.0  ;;  %v956_v24 = vld [vmem:[%s1478_s4] sm:$0xff] }
 0x397   :  { %v749_v37 = vadd.f32 %v748_v34, %v747_v27 }
 0x399   :  { %v720_v8 = vpop.xlane.xlu1 %719  ;;  %v751_v48 = vadd.f32 %v750_v45, %v749_v37 }
 0x39a   :  { %v706_v5 = vpop.xlane.xlu2 %705  ;;  %v764_v6 = vmul.f32 %v1331_v52, %v720_v8  ;;  %v728_v18 = vpop.xlane.xlu0 %727 }
 0x39b   :  { %v739_v36 = vmul.f32 %v1362_v20, %v706_v5  ;;  %v768_v40 = vmul.f32 %v1353_v1, %v728_v18  ;;  %v57_v18 = vld [vmem:[%s1477_s3] sm:$0xf]  ;;  %s987_s3 = smov [#allocation2]  }
 0x39c   :  { %v772_v12 = vsel %vm457_vm8, %v764_v6, 0.0  ;;  %s854_s4 = sshll.u32 %s987_s3, 4  ;;  %s855_s4 = int_to_ptr.vmem [resolvable:$true] %s854_s4 }
 0x39d   :  { %v773_v26 = vadd.f32 %v772_v12, %v771_v21  ;;  %v780_v23 = vsel %vm457_vm8, %v768_v40, 0.0 }
 0x39f   :  { %v775_v42 = vadd.f32 %v774_v46, %v773_v26  ;;  %v813_v26 = vunpack.c.l.bf16 %v57_v18 }
 0x3a1   :  { %v726_v52 = vpop.xlane.xlu1 %725 }
 0x3a2   :  { %v724_v43 = vpop.xlane.xlu2 %723  ;;  %v767_v32 = vmul.f32 %v1350_v2, %v726_v52  ;;  %v732_v47 = vpop.xlane.xlu0 %731 }
 0x3a3   :  { %v766_v28 = vmul.f32 %v1343_v59, %v724_v43  ;;  %v752_v59 = vsel %vm457_vm8, %v739_v36, 0.0  ;;  %v770_v54 = vmul.f32 %v1365_v55, %v732_v47 }
 0x3a4   :  { %v778_v41 = vsel %vm457_vm8, %v767_v32, 0.0  ;;  %v753_v31 = vadd.f32 %v752_v59, %v751_v48 }
 0x3a5   :  { %v776_v38 = vsel %vm457_vm8, %v766_v28, 0.0  ;;  %v784_v49 = vsel %vm457_vm8, %v770_v54, 0.0 }
 0x3a6   :  { %v777_v39 = vadd.f32 %v776_v38, %v775_v42  ;;  %v986_v42 = vmov 2  }
 0x3a7   :  { %948 = vset.pattern.permute.xlu2 %v986_v42  ;;  %949 = vset.pattern.permute.xlu0 %v986_v42 }
 0x3a8   :  { %v779_v2 = vadd.f32 %v778_v41, %v777_v39 }
 0x3a9   :  { %v708_v50 = vpop.xlane.xlu1 %707 }
 0x3aa   :  { %v730_v51 = vpop.xlane.xlu2 %729  ;;  %v740_v53 = vmul.f32 %v1365_v55, %v708_v50  ;;  %v781_v56 = vadd.f32 %v780_v23, %v779_v2 }
 0x3ab   :  { %v769_v1 = vmul.f32 %v1362_v20, %v730_v51 }
 0x3ac   :  { %v754_v57 = vsel %vm457_vm8, %v740_v53, 0.0 }
 0x3ad   :  { %v782_v58 = vsel %vm457_vm8, %v769_v1, 0.0  ;;  %v755_v13 = vadd.f32 %v754_v57, %v753_v31 }
 0x3ae   :  { %v783_v15 = vadd.f32 %v782_v58, %v781_v56 }
 0x3af   :  { %v756_v44 = vrot.slane %v755_v13, 4 }
 0x3b0   :  { %v785_v19 = vadd.f32 %v784_v49, %v783_v15 }
 0x3b1   :  { %v757_v60 = vadd.f32 %v756_v44, %v755_v13 }
 0x3b2   :  { %v786_v7 = vrot.slane %v785_v19, 4 }
 0x3b3   :  { %v758_v10 = vrot.slane %v757_v60, 2 }
 0x3b4   :  { %v787_v30 = vadd.f32 %v786_v7, %v785_v19 }
 0x3b5   :  { %v759_v62 = vadd.f32 %v758_v10, %v757_v60 }
 0x3b6   :  { %v788_v3 = vrot.slane %v787_v30, 2 }
 0x3b7   :  { %v760_v55 = vrot.slane %v759_v62, 1 }
 0x3b8   :  { %v789_v22 = vadd.f32 %v788_v3, %v787_v30 }
 0x3b9   :  { %v761_v20 = vadd.f32 %v760_v55, %v759_v62 }
 0x3ba   :  { %v790_v63 = vrot.slane %v789_v22, 1 }
 0x3bb   :  { %v762_v0 = vmul.f32 0.015625, %v761_v20 }
 0x3bc   :  { %v791_v8 = vadd.f32 %v790_v63, %v789_v22 }
 0x3bd   :  { %v793_v4 = vmul.f32 %v762_v0, %v762_v0 }
 0x3be   :  { %v792_v11 = vmul.f32 0.015625, %v791_v8 }
 0x3c0   :  { %v794_v35 = vsub.f32 %v792_v11, %v793_v4 }
 0x3c2   :  { %v795_v5 = vmax.f32 %v794_v35, 0.0 }
 0x3c4   :  { %v796_v6 = vadd.f32 1e-05, %v795_v5 }
 0x3c6   :  { %954 = vrsqrt.f32 %v796_v6  ;;  %vm803_vm2 = vweird.f32 %v796_v6 }
 0x3cc   :  { %v955_v9 = vpop.eup %954 }
 0x3cd   :  { %v798_v29 = vmul.f32 %v955_v9, %v796_v6  ;;  %vm804_vm1 = vweird.f32 %v955_v9 }
 0x3ce   :  { %vm805_vm3 = vmor %vm803_vm2, %vm804_vm1 }
 0x3cf   :  { %v799_v12 = vmul.f32 %v955_v9, %v798_v29 }
 0x3d1   :  { %v800_v14 = vmul.f32 0.5, %v799_v12 }
 0x3d3   :  { %v801_v17 = vsub.f32 1.5, %v800_v14 }
 0x3d5   :  { %v802_v21 = vmul.f32 %v955_v9, %v801_v17 }
 0x3d7   :  { %v806_v61 = vsel %vm805_vm3, %v955_v9, %v802_v21 }
 0x3d8   :  { %v807_v25 = vmul.f32 %v956_v24, %v806_v61 }
 0x3da   :  { %v814_v27 = vperm.slane %v807_v25, 4  ;;  %v808_v52 = vmul.f32 %v807_v25, %v762_v0 }
 0x3dc   :  { %v815_v43 = vmul.f32 %v814_v27, %v813_v26  ;;  %v810_v46 = vrot.slane %v808_v52, 7 }
 0x3de   :  { %v816_v28 = vpack.c.bf16 %v815_v43, %v815_v43  ;;  %v812_v32 = vsub.f32 %v956_v24, %v810_v46 }
 0x3e0   :  { %882 = vmatmul.msk.bf16.vlgmr.msrb.gmra.mxu2 %vm457_vm8, %v816_v28  ;;  %v817_v33 = vperm.slane %v812_v32, 5 }
 0x3e2   :  { %v818_v34 = vmul.f32 %v817_v33, %v813_v26 }
 0x3e4   :  { %v819_v36 = vsel %vm457_vm8, %v818_v34, 0.0 }
 0x3e5   :  { %820 = vadd.xlane.f32.xlu1 %v819_v36 }
 0x458   :  { %v821_v37 = vpop.xlane.xlu1 %820 }
 0x459   :  { %v822_v38 = vadd.f32 %v821_v37, %v1268_v16 }
 0x45b   :  { %829 = vperm.xlu2 %948, %v822_v38  }
 0x463   :  { %v844_v39 = vpop.f32.mrf.mxu2 }
 0x46b   :  { %v846_v40 = vpop.f32.mrf.mxu2 }
 0x4b5   :  { %v830_v41 = vpop.permute.xlu2 %829 }
 0x4b6   :  { %v845_v45 = vadd.f32 %v844_v39, %v830_v41 }
 0x4b8   :  { %848 = vst [vmem:[#allocation2] sm:$0xff] %v845_v45 }
 0x4b9   :  { %859 = dma.vmem_to_hbm [thread:$0]  %s855_s4, 128, %s857_s15, [#allocation3]  }
 0x4ba   :  { %981 = dma.done.wait [#allocation3], 128  }
 0x4bb   :  { %982 = vsyncadd [#allocation3], 4294967168 }
 0x4bc   :  { %864 = vsyncpa [#allocation3], 1 }

</bundles_post_ra>
